<compile_context>
chip_gen: v7x
topology: tpu7x:2x2x1
jax: 0.10.0
libtpu: 0.0.40
codegen_flags: <defaults>
</compile_context>

<pallas_src>
import functools

import jax
import jax.numpy as jnp
from jax.experimental import pallas as pl
from jax.experimental.pallas import tpu as pltpu


def _pick_tile(total, cap):
    """Largest multiple of 128 that divides `total`, capped at `cap`.
    Falls back to the full extent (always a legal block size)."""
    best = None
    t = 128
    while t <= min(total, cap):
        if total % t == 0:
            best = t
        t += 128
    return best if best is not None else total


# ----------------------------------------------------------------------------
# Kernel 1: fused RMSNorm + qkv 1x1-conv projection
# ----------------------------------------------------------------------------
def _norm_qkv_kernel(x_ref, w_ref, o_ref):
    # x_ref: (C, T) spatial tile, channels on sublanes.
    # w_ref: (3*hidden, C) qkv weight with g*sqrt(C) pre-folded into columns.
    x = x_ref[...].astype(jnp.float32)
    ss = jnp.sum(x * x, axis=0, keepdims=True)                     # (1, T)
    # 1/max(||x||, 1e-12) == rsqrt(max(||x||^2, 1e-24))  (EUP, not a VALU div)
    inv = jax.lax.rsqrt(jnp.maximum(ss, jnp.float32(1e-24)))
    xn = x * inv                                                   # (C, T)
    o_ref[...] = jnp.dot(w_ref[...], xn,
                         preferred_element_type=jnp.float32).astype(o_ref.dtype)


def _norm_qkv(x3, w_qkv_folded, *, tile_hw):
    B, C, HW = x3.shape
    O = w_qkv_folded.shape[0]
    return pl.pallas_call(
        _norm_qkv_kernel,
        out_shape=jax.ShapeDtypeStruct((B, O, HW), x3.dtype),
        grid_spec=pltpu.PrefetchScalarGridSpec(
            num_scalar_prefetch=0,
            grid=(B, HW // tile_hw),
            in_specs=[
                pl.BlockSpec((pl.Squeezed(), C, tile_hw), lambda b, s: (b, 0, s)),
                pl.BlockSpec((O, C), lambda b, s: (0, 0)),
            ],
            out_specs=pl.BlockSpec((pl.Squeezed(), O, tile_hw),
                                   lambda b, s: (b, 0, s)),
        ),
        compiler_params=pltpu.CompilerParams(
            dimension_semantics=("parallel", "parallel")),
    )(x3, w_qkv_folded)


# ----------------------------------------------------------------------------
# Kernel 2: softmax attention (per batch*head, per q-tile, full K/V in block)
# ----------------------------------------------------------------------------
def _attention_kernel(q_ref, k_ref, v_ref, o_ref, *, scale):
    # q_ref: (D, Tq)   k_ref: (S, D)   v_ref: (D, S)   o_ref: (D, Tq)
    q = q_ref[...].astype(jnp.float32)
    k = k_ref[...].astype(jnp.float32)
    v = v_ref[...].astype(jnp.float32)
    s = jnp.dot(k, q, preferred_element_type=jnp.float32) * jnp.float32(scale)
    m = jnp.max(s, axis=0, keepdims=True)                          # (1, Tq)
    p = jnp.exp(s - m)                                             # (S, Tq)
    l = jnp.sum(p, axis=0, keepdims=True)                          # (1, Tq)
    o = jnp.dot(v, p, preferred_element_type=jnp.float32)          # (D, Tq)
    o_ref[...] = (o * pl.reciprocal(l, approx=True)).astype(o_ref.dtype)


def _attention(q, k, v, *, scale, tile_q):
    BH, D, HW = q.shape
    S = k.shape[1]
    kernel = functools.partial(_attention_kernel, scale=scale)
    return pl.pallas_call(
        kernel,
        out_shape=jax.ShapeDtypeStruct((BH, D, HW), q.dtype),
        grid_spec=pltpu.PrefetchScalarGridSpec(
            num_scalar_prefetch=0,
            grid=(BH, HW // tile_q),
            in_specs=[
                pl.BlockSpec((pl.Squeezed(), D, tile_q), lambda b, i: (b, 0, i)),
                pl.BlockSpec((pl.Squeezed(), S, D), lambda b, i: (b, 0, 0)),
                pl.BlockSpec((pl.Squeezed(), D, S), lambda b, i: (b, 0, 0)),
            ],
            out_specs=pl.BlockSpec((pl.Squeezed(), D, tile_q),
                                   lambda b, i: (b, 0, i)),
        ),
        compiler_params=pltpu.CompilerParams(
            dimension_semantics=("parallel", "parallel")),
    )(q, k, v)


# ----------------------------------------------------------------------------
# Kernel 3: output 1x1-conv projection + bias
# ----------------------------------------------------------------------------
def _proj_out_kernel(x_ref, w_ref, b_ref, o_ref):
    # x_ref: (hidden, T)   w_ref: (C, hidden)   b_ref: (C, 1)
    o = jnp.dot(w_ref[...], x_ref[...], preferred_element_type=jnp.float32)
    o_ref[...] = (o + b_ref[...].astype(jnp.float32)).astype(o_ref.dtype)


def _proj_out(x3, w_out, b_out, *, tile_hw):
    B, Cin, HW = x3.shape
    Cout = w_out.shape[0]
    return pl.pallas_call(
        _proj_out_kernel,
        out_shape=jax.ShapeDtypeStruct((B, Cout, HW), x3.dtype),
        grid_spec=pltpu.PrefetchScalarGridSpec(
            num_scalar_prefetch=0,
            grid=(B, HW // tile_hw),
            in_specs=[
                pl.BlockSpec((pl.Squeezed(), Cin, tile_hw), lambda b, s: (b, 0, s)),
                pl.BlockSpec((Cout, Cin), lambda b, s: (0, 0)),
                pl.BlockSpec((Cout, 1), lambda b, s: (0, 0)),
            ],
            out_specs=pl.BlockSpec((pl.Squeezed(), Cout, tile_hw),
                                   lambda b, s: (b, 0, s)),
        ),
        compiler_params=pltpu.CompilerParams(
            dimension_semantics=("parallel", "parallel")),
    )(x3, w_out, b_out)


# ----------------------------------------------------------------------------
# Full Attention.forward
# ----------------------------------------------------------------------------
def attention_forward(x, g, w_qkv, mem_kv, w_out, b_out, *, heads, dim_head):
    """Forward pass of denoising_diffusion_pytorch Attention.

    x      : (B, C, H, W)
    g      : (1, C, 1, 1)              RMSNorm gain
    w_qkv  : (3*heads*dim_head, C)     to_qkv 1x1 conv weight (no bias)
    mem_kv : (2, heads, M, dim_head)   learned memory key/values
    w_out  : (C, heads*dim_head)       to_out 1x1 conv weight
    b_out  : (C,)                      to_out bias
    """
    B, C, H, W = x.shape
    HW = H * W
    hidden = heads * dim_head
    M = mem_kv.shape[2]
    S = HW + M

    # --- RMSNorm + qkv projection (fold g * sqrt(C) into the weight columns) --
    g_scaled = g.reshape(1, C).astype(jnp.float32) * (float(C) ** 0.5)
    w_qkv_folded = (w_qkv.astype(jnp.float32) * g_scaled).astype(x.dtype)
    tile_hw = _pick_tile(HW, 512)
    qkv = _norm_qkv(x.reshape(B, C, HW), w_qkv_folded, tile_hw=tile_hw)

    # --- split heads; keep channels-first layouts expected by the kernel -----
    q = qkv[:, 0 * hidden:1 * hidden].reshape(B * heads, dim_head, HW)
    k_cf = qkv[:, 1 * hidden:2 * hidden].reshape(B, heads, dim_head, HW)
    v_cf = qkv[:, 2 * hidden:3 * hidden].reshape(B, heads, dim_head, HW)

    # prepend learned memory kv (repeated over batch); pure layout glue in JAX
    mk = jnp.broadcast_to(mem_kv[0][None], (B, heads, M, dim_head))
    mv = jnp.broadcast_to(jnp.swapaxes(mem_kv[1], 1, 2)[None],
                          (B, heads, dim_head, M))
    k = jnp.concatenate([mk, jnp.swapaxes(k_cf, 2, 3)], axis=2)    # (B,h,S,D)
    v = jnp.concatenate([mv, v_cf], axis=3)                        # (B,h,D,S)
    k = k.reshape(B * heads, S, dim_head)
    v = v.reshape(B * heads, dim_head, S)

    # --- attention ------------------------------------------------------------
    tile_q = _pick_tile(HW, 256)
    out = _attention(q, k, v, scale=float(dim_head) ** -0.5, tile_q=tile_q)

    # --- merge heads + output projection ---------------------------------------
    out = out.reshape(B, hidden, HW)
    y = _proj_out(out, w_out, b_out.reshape(C, 1), tile_hw=tile_hw)
    return y.reshape(B, C, H, W)


# ----------------------------------------------------------------------------
# Pure-JAX reference (mirrors the PyTorch module) and test
# ----------------------------------------------------------------------------
def _reference(x, g, w_qkv, mem_kv, w_out, b_out, heads, dim_head):
    B, C, H, W = x.shape
    HW = H * W
    hidden = heads * dim_head
    hp = jax.lax.Precision.HIGHEST
    norm = jnp.sqrt(jnp.sum(x * x, axis=1, keepdims=True))
    xn = x / jnp.maximum(norm, 1e-12) * g * (float(C) ** 0.5)
    qkv = jnp.einsum('oc,bchw->bohw', w_qkv, xn, precision=hp)
    q, k, v = jnp.split(qkv, 3, axis=1)

    def rearr(t):  # 'b (h c) x y -> b h (x y) c'
        return t.reshape(B, heads, dim_head, HW).transpose(0, 1, 3, 2)

    q, k, v = map(rearr, (q, k, v))
    M = mem_kv.shape[2]
    mk = jnp.broadcast_to(mem_kv[0][None], (B, heads, M, dim_head))
    mv = jnp.broadcast_to(mem_kv[1][None], (B, heads, M, dim_head))
    k = jnp.concatenate([mk, k], axis=2)
    v = jnp.concatenate([mv, v], axis=2)
    sim = jnp.einsum('bhid,bhjd->bhij', q, k, precision=hp) * (float(dim_head) ** -0.5)
    attn = jax.nn.softmax(sim, axis=-1)
    out = jnp.einsum('bhij,bhjd->bhid', attn, v, precision=hp)
    out = out.transpose(0, 1, 3, 2).reshape(B, hidden, H, W)
    return jnp.einsum('oc,bchw->bohw', w_out, out, precision=hp) + \
        b_out[None, :, None, None]


if __name__ == "__main__":
    key = jax.random.PRNGKey(0)
    B, C, H, W = 2, 4, 16, 16
    heads, dim_head, num_mem_kv = 4, 32, 4
    hidden = heads * dim_head

    k1, k2, k3, k4, k5 = jax.random.split(key, 5)
    x = jax.random.normal(k1, (B, C, H, W), dtype=jnp.float32)
    g = jnp.ones((1, C, 1, 1), dtype=jnp.float32)          # RMSNorm init = ones
    w_qkv = jax.random.normal(k2, (hidden * 3, C), dtype=jnp.float32) / jnp.sqrt(C)
    mem_kv = jax.random.normal(k3, (2, heads, num_mem_kv, dim_head), dtype=jnp.float32)
    w_out = jax.random.normal(k4, (C, hidden), dtype=jnp.float32) / jnp.sqrt(hidden)
    b_out = 0.1 * jax.random.normal(k5, (C,), dtype=jnp.float32)

    out = attention_forward(x, g, w_qkv, mem_kv, w_out, b_out,
                            heads=heads, dim_head=dim_head)
    out = jax.block_until_ready(out)

    ref = _reference(x, g, w_qkv, mem_kv, w_out, b_out, heads, dim_head)
    assert out.shape == (B, C, H, W)
    max_diff = jnp.max(jnp.abs(out - ref))
    assert jnp.allclose(out, ref, atol=2e-2, rtol=2e-2), \
        f"mismatch vs reference, max abs diff = {max_diff}"

    print("KERNEL_OK")
</pallas_src>

<mosaic_0001>
module attributes {stable_mosaic.version = 11 : i64} {
  func.func @_norm_qkv_kernel(%arg0: i32, %arg1: i32, %arg2: memref<1x4x256xf32, #tpu.memory_space<vmem>>, %arg3: memref<384x4xf32, #tpu.memory_space<vmem>>, %arg4: memref<1x384x256xf32, #tpu.memory_space<vmem>>) attributes {dimension_semantics = [#tpu.dimension_semantics<parallel>, #tpu.dimension_semantics<parallel>], iteration_bounds = array<i64: 2, 1>, scalar_prefetch = 0 : i64, scratch_operands = 0 : i64, tpu.core_type = #tpu.core_type<tc>, window_params = [{transform_indices = @transform_0, window_bounds = array<i64: 1, 4, 256>}, {pipeline_mode = #tpu.pipeline_mode<synchronous>, transform_indices = @transform_1, window_bounds = array<i64: 384, 4>}, {transform_indices = @transform_2, window_bounds = array<i64: 1, 384, 256>}]} {
    %c0 = arith.constant 0 : index
    %c0_0 = arith.constant 0 : index
    %c0_1 = arith.constant 0 : index
    %0 = vector.load %arg2[%c0, %c0_0, %c0_1] : memref<1x4x256xf32, #tpu.memory_space<vmem>>, vector<1x4x256xf32>
    %1 = vector.shape_cast %0 : vector<1x4x256xf32> to vector<4x256xf32>
    %2 = arith.mulf %1, %1 : vector<4x256xf32>
    %cst = arith.constant dense<0.000000e+00> : vector<256xf32>
    %3 = vector.multi_reduction <add>, %2, %cst [0] : vector<4x256xf32> to vector<256xf32>
    %4 = vector.shape_cast %3 : vector<256xf32> to vector<1x256xf32>
    %cst_2 = arith.constant 1.000000e-24 : f32
    %5 = vector.broadcast %cst_2 : f32 to vector<1x256xf32>
    %6 = arith.maximumf %4, %5 : vector<1x256xf32>
    %7 = math.rsqrt %6 : vector<1x256xf32>
    %8 = vector.broadcast %7 : vector<1x256xf32> to vector<4x256xf32>
    %9 = arith.mulf %1, %8 : vector<4x256xf32>
    %c0_3 = arith.constant 0 : index
    %c0_4 = arith.constant 0 : index
    %10 = vector.load %arg3[%c0_3, %c0_4] : memref<384x4xf32, #tpu.memory_space<vmem>>, vector<384x4xf32>
    %cst_5 = arith.constant dense<0.000000e+00> : vector<384x256xf32>
    %11 = tpu.matmul %10, %9, %cst_5 {dimension_numbers = #tpu.dot_dimension_numbers<[1], [0], [0], [1], [0, 0, 1, 1], [], []>} : vector<384x4xf32>, vector<4x256xf32>, vector<384x256xf32> -> vector<384x256xf32>
    %c0_6 = arith.constant 0 : index
    %c0_7 = arith.constant 0 : index
    %c0_8 = arith.constant 0 : index
    %12 = vector.load %arg4[%c0_6, %c0_7, %c0_8] : memref<1x384x256xf32, #tpu.memory_space<vmem>>, vector<1x384x256xf32>
    %13 = vector.shape_cast %12 : vector<1x384x256xf32> to vector<384x256xf32>
    %14 = vector.shape_cast %11 : vector<384x256xf32> to vector<1x384x256xf32>
    tpu.vector_store %arg4[%c0_6, %c0_7, %c0_8], %14 {strides = array<i32>} : memref<1x384x256xf32, #tpu.memory_space<vmem>>, vector<1x384x256xf32>,
    return
  }
  func.func @transform_0(%arg0: i32, %arg1: i32) -> (i32, i32, i32) {
    %c0_i32 = arith.constant 0 : i32
    %c0_i32_0 = arith.constant 0 : i32
    return %arg0, %c0_i32, %arg1 : i32, i32, i32
  }
  func.func @transform_1(%arg0: i32, %arg1: i32) -> (i32, i32) {
    %c0_i32 = arith.constant 0 : i32
    %c0_i32_0 = arith.constant 0 : i32
    %c0_i32_1 = arith.constant 0 : i32
    return %c0_i32, %c0_i32_0 : i32, i32
  }
  func.func @transform_2(%arg0: i32, %arg1: i32) -> (i32, i32, i32) {
    %c0_i32 = arith.constant 0 : i32
    %c0_i32_0 = arith.constant 0 : i32
    return %arg0, %c0_i32, %arg1 : i32, i32, i32
  }
}

</mosaic_0001>

<bundles_post_ra>
// kernel: tpu_custom_call.1
= control target key start
LH: loop header
LB: loop body
LE: loop exit
PB: predicated region body
PF: predicated region fallthrough
CT: control target
= control target key end

     0   :  { %7 = vsyncpa [#allocation3], 0  ;;  %s1635_s0 = inlined_call_operand.vmem [shape: f32[2,4,256], index: 0, kind: input, shape index: {}]   ;;  %s1636_s1 = inlined_call_operand.vmem [shape: f32[384,4], index: 1, kind: input, shape index: {}]   ;;  %s1637_s2 = inlined_call_operand.hbm [shape: f32[2,384,256], index: 2, kind: output, shape index: {}]  }
   0x1   :  { %9 = vsyncpa [#allocation3 + $0x1], 0  ;;  %s1171_s9 = smov 0   ;;  %s1173_s10 = smov 0  }
   0x2   :  { %s1175_s11 = smov 0   ;;  %s1177_s12 = smov 0  }
   0x3   :  { %s1179_s13 = smov 0   ;;  %s1181_s14 = smov 0  }
   0x4 LB: > { %s945_s15 = sadd.s32 4294967295, %s1150_s14   ;;  %s946_s16 = sadd.s32 4294967294, %s1150_s14   ;;  %s1150_s14 = sphi %s1181_s14, %s15_s14   ;;  %s1146_s13 = sphi %s1179_s13, %s1644_s13   ;;  %s1142_s12 = sphi %s1177_s12, %s1643_s12   ;;  %s1138_s11 = sphi %s1175_s11, %s1642_s11   ;;  %s1134_s10 = sphi %s1173_s10, %s1641_s10   ;;  %s1130_s9 = sphi %s1171_s9, %s1640_s9  }
   0x5   : > { %s27_s17 = sadd.s32 1, %s1146_s13  ;;  %s85_s18 = sadd.s32 1, %s1138_s11 }
   0x6   : > { %p29_p0 = scmp.ge.s32.totalorder %s27_s17, 2  ;;  %p95_p1 = scmp.ne.s32.totalorder %s1138_s11, %s1134_s10 }
   0x7   : > { %p96_p2 = scmp.eq.s32.totalorder %s945_s15, 1  ;;  %p101_p3 = scmp.ne.s32.totalorder %s1134_s10, %s1130_s9 }
   0x8   : > { %s1646_s17 = smov (%p29_p0, %s27_s17), 0  ;;  %p102_p5 = scmp.eq.s32.totalorder %s946_s16, 1 }
   0x9   : > { %p1211_p4 = por %p96_p2, %p95_p1  ;;  %s80_s20 = ssub.s32 %s1146_s13, %s1646_s17 }
   0xa   : > { %p949_p6 = scmp.ge.s32.totalorder %s1150_s14, 1  ;;  %p83_p7 = scmp.eq.s32.totalorder %s80_s20, 0 }
   0xb   : > { %p1218_p8 = por %p102_p5, %p101_p3  ;;  %p136_p9 = scmp.lt.s32.totalorder %s1150_s14, 3 }
   0xc   : > { %s1224_s22 = scalar_select %p83_p7, %s1138_s11, %s85_s18  }
   0xd   : > { %p137_p10 = pnand %p949_p6, %p136_p9 }
   0xe   : > { %p163_p11 = scmp.lt.s32.totalorder (!%p137_p10), %s1142_s12, 1  ;;  %v1152_v0 = vmov (!%p137_p10), 0.0   ;;  %vm178_vm0 = vcmask (!%p137_p10), 1043456   ;;  %v202_v25 = vld [vmem:[%s1636_s1] sm:$0xff] (!%p137_p10)  ;;  %vm252_vm1 = vcmask (!%p137_p10), 31744   ;;  %v203_v27 = vld [vmem:[%s1636_s1 + $0x8] sm:$0xff] (!%p137_p10) }
   0xf   : > { %140 = sbr.rel (%p137_p10) target bundleno = 385 (0x181), region = 28  ;;  %465 = vmatprep.mubr.f32.mxu0 (!%p137_p10), %v1152_v0  ;;  %609 = vmatprep.mubr.f32.mxu1 (!%p137_p10), %v1152_v0  ;;  %v226_v26 = vld [vmem:[%s1636_s1 + $0xc0] sm:$0xff] (!%p137_p10)  ;;  %v227_v28 = vld [vmem:[%s1636_s1 + $0xc8] sm:$0xff] (!%p137_p10)  ;;  %v204_v29 = vld [vmem:[%s1636_s1 + $0x10] sm:$0xff] (!%p137_p10)  ;;  %s159_s6 = sand.u32 (!%p137_p10), 1, %s1134_s10  }
  0x10   : > { %v228_v30 = vld [vmem:[%s1636_s1 + $0xd0] sm:$0xff] (!%p137_p10)  ;;  %v205_v31 = vld [vmem:[%s1636_s1 + $0x18] sm:$0xff] (!%p137_p10)  ;;  %v206_v33 = vld [vmem:[%s1636_s1 + $0x20] sm:$0xff] (!%p137_p10)  ;;  %s1008_s7 = smul.u32 (!%p137_p10), 768, %s159_s6  ;;  %s1153_s25 = smov (!%p137_p10), [#allocation2]  }
  0x11   : > { %v229_v32 = vld [vmem:[%s1636_s1 + $0xd8] sm:$0xff] (!%p137_p10)  ;;  %v230_v34 = vld [vmem:[%s1636_s1 + $0xe0] sm:$0xff] (!%p137_p10)  ;;  %v207_v35 = vld [vmem:[%s1636_s1 + $0x28] sm:$0xff] (!%p137_p10)  ;;  %s1009_s15 = smul.u32 (!%p137_p10), 12288, %s1142_s12  ;;  %s1076_s26 = sshll.u32 (!%p137_p10), %s1153_s25, 4  ;;  %s1077_s26 = int_to_ptr.vmem [resolvable:$false] %s1076_s26 }
  0x12   : > { %v231_v36 = vld [vmem:[%s1636_s1 + $0xe8] sm:$0xff] (!%p137_p10)  ;;  %v208_v37 = vld [vmem:[%s1636_s1 + $0x30] sm:$0xff] (!%p137_p10)  ;;  %v209_v39 = vld [vmem:[%s1636_s1 + $0x38] sm:$0xff] (!%p137_p10)  ;;  %s1480_s8 = scalar_lea.vmem (!%p137_p10), [#allocation2], %s1008_s7 }
  0x13   : > { %v232_v38 = vld [vmem:[%s1636_s1 + $0xf0] sm:$0xff] (!%p137_p10)  ;;  %v233_v40 = vld [vmem:[%s1636_s1 + $0xf8] sm:$0xff] (!%p137_p10)  ;;  %v210_v41 = vld [vmem:[%s1636_s1 + $0x40] sm:$0xff] (!%p137_p10)  ;;  %s866_s16 = sshll.u32 (!%p137_p10), %s1480_s8, 4  ;;  %s1581_s16 = int_to_ptr.vmem [resolvable:$true] %s866_s16 }
  0x14   : > { %v234_v42 = vld [vmem:[%s1636_s1 + $0x100] sm:$0xff] (!%p137_p10)  ;;  %v211_v43 = vld [vmem:[%s1636_s1 + $0x48] sm:$0xff] (!%p137_p10)  ;;  %v212_v45 = vld [vmem:[%s1636_s1 + $0x50] sm:$0xff] (!%p137_p10)  ;;  %p1079_p1 = scmp.lt.s32.totalorder (!%p137_p10), %s1581_s16, %s1077_s26 }
  0x15   : > { %v235_v44 = vld [vmem:[%s1636_s1 + $0x108] sm:$0xff] (!%p137_p10)  ;;  %v236_v46 = vld [vmem:[%s1636_s1 + $0x110] sm:$0xff] (!%p137_p10)  ;;  %v213_v47 = vld [vmem:[%s1636_s1 + $0x58] sm:$0xff] (!%p137_p10) }
  0x16   : > { %s164_s23 = scalar_select %p163_p11, %s1142_s12, 1  ;;  %v237_v48 = vld [vmem:[%s1636_s1 + $0x118] sm:$0xff]  ;;  %v214_v49 = vld [vmem:[%s1636_s1 + $0x60] sm:$0xff]  ;;  %v215_v51 = vld [vmem:[%s1636_s1 + $0x68] sm:$0xff] }
  0x17   : > { %v238_v50 = vld [vmem:[%s1636_s1 + $0x120] sm:$0xff]  ;;  %v239_v52 = vld [vmem:[%s1636_s1 + $0x128] sm:$0xff]  ;;  %v216_v53 = vld [vmem:[%s1636_s1 + $0x70] sm:$0xff]  ;;  %s1589_s12 = scalar_lea.sflag [#allocation3], %s159_s6 }
  0x18   : > { %s1005_s24 = sshll.u32 %s164_s23, 3  ;;  %v240_v54 = vld [vmem:[%s1636_s1 + $0x130] sm:$0xff]  ;;  %v217_v55 = vld [vmem:[%s1636_s1 + $0x78] sm:$0xff]  ;;  %v218_v57 = vld [vmem:[%s1636_s1 + $0x80] sm:$0xff]  ;;  %s1579_s23 = scalar_lea.hbm %s1637_s2, %s1009_s15 }
  0x19   : > { %s170_s27 = scalar_lea.vmem %s1635_s0, %s1005_s24  ;;  %v241_v56 = vld [vmem:[%s1636_s1 + $0x138] sm:$0xff]  ;;  %v242_v58 = vld [vmem:[%s1636_s1 + $0x140] sm:$0xff]  ;;  %v219_v59 = vld [vmem:[%s1636_s1 + $0x88] sm:$0xff]  ;;  %s1072_s24 = scalar_lea.vmem %s1581_s16, 12288 }
  0x1a   : > { %v173_v1 = vld [vmem:[%s170_s27] sm:$0xff]  ;;  %v243_v60 = vld [vmem:[%s1636_s1 + $0x148] sm:$0xff]  ;;  %v220_v61 = vld [vmem:[%s1636_s1 + $0x90] sm:$0xff]  ;;  %p1073_p12 = scmp.ne.s32.totalorder %s1581_s16, %s1072_s24  ;;  %s1078_s27 = scalar_lea.vmem %s1077_s26, 24576 }
  0x1b   : > { %v174_v2 = vmul.f32 %v173_v1, %v173_v1  ;;  %v244_v62 = vld [vmem:[%s1636_s1 + $0x150] sm:$0xff]  ;;  %v221_v63 = vld [vmem:[%s1636_s1 + $0x98] sm:$0xff]  ;;  %p1080_p2 = scmp.lt.s32.totalorder %s1078_s27, %s1072_s24 }
  0x1c   : > { %p1074_p13 = pnand %p1073_p12, %p1211_p4 }
  0x1d   : > { %v176_v3 = vcombine.high %v174_v2, %v174_v2  ;;  %v179_v4 = vsel %vm178_vm0, %v174_v2, 0.0  ;;  %v222_v2 = vld [vmem:[%s1636_s1 + $0xa0] sm:$0xff]  ;;  %p1081_p3 = por %p1080_p2, %p1079_p1 }
  0x1e   : > { %v180_v5 = vrot.slane %v179_v4, 4  ;;  %p1075_p0 = pneg %p1074_p13 }
  0x1f   : > { %v186_v6 = vsel %vm178_vm0, %v176_v3, 0.0  ;;  %v246_v3 = vld [vmem:[%s1636_s1 + $0x160] sm:$0xff] }
  0x20   : > { %v181_v7 = vadd.f32 %v180_v5, %v179_v4  ;;  %v187_v8 = vrot.slane %v186_v6, 4  ;;  %v223_v4 = vld [vmem:[%s1636_s1 + $0xa8] sm:$0xff]  ;;  %p1082_p5 = pnand %p1081_p3, %p1075_p0 }
  0x21   : > { %v247_v5 = vld [vmem:[%s1636_s1 + $0x168] sm:$0xff] }
  0x22   : > { %v182_v9 = vrot.slane %v181_v7, 2  ;;  %v188_v10 = vadd.f32 %v187_v8, %v186_v6  ;;  %v224_v6 = vld [vmem:[%s1636_s1 + $0xb0] sm:$0xff]  ;;  %v225_v8 = vld [vmem:[%s1636_s1 + $0xb8] sm:$0xff] }
  0x24   : > { %v183_v11 = vadd.f32 %v182_v9, %v181_v7  ;;  %v189_v12 = vrot.slane %v188_v10, 2  ;;  %v248_v7 = vld [vmem:[%s1636_s1 + $0x170] sm:$0xff]  ;;  %v249_v9 = vld [vmem:[%s1636_s1 + $0x178] sm:$0xff] }
  0x26   : > { %v184_v13 = vrot.slane %v183_v11, 1  ;;  %v190_v14 = vadd.f32 %v189_v12, %v188_v10 }
  0x28   : > { %v185_v15 = vadd.f32 %v184_v13, %v183_v11  ;;  %v191_v16 = vrot.slane %v190_v14, 1 }
  0x2a   : > { %v192_v17 = vadd.f32 %v191_v16, %v190_v14  ;;  %v193_v18 = vmax.f32 %v185_v15, 1e-24 }
  0x2c   : > { %v194_v19 = vmax.f32 %v192_v17, 1e-24  ;;  %1068 = vrsqrt.f32 %v193_v18 }
  0x2e   : > { %1070 = vrsqrt.f32 %v194_v19 }
  0x36   : > { %v1069_v20 = vpop.eup %1068 }
  0x38   : > { %v1071_v21 = vpop.eup %1070 }
  0x39   : > { %v199_v22 = vcombine.low %v1069_v20, %v1071_v21 }
  0x3b   : > { %v201_v23 = vmul.f32 %v199_v22, %v173_v1  ;;  %v245_v1 = vld [vmem:[%s1636_s1 + $0x158] sm:$0xff] }
  0x3d   : > { %v251_v24 = vcombine.high %v201_v23, %v201_v23 }
  0x3f   : > { %952 = vmatprep.subr.msk.mxu0 %vm178_vm0, %v251_v24  ;;  %1006 = vmatprep.subr.msk.mxu1 %vm178_vm0, %v251_v24 }
  0x40   : > { %953 = vmatpush1.msk.msra.mxu0 %vm178_vm0, %v201_v23  ;;  %1007 = vmatpush1.msk.msra.mxu1 %vm178_vm0, %v201_v23 }
  0x41   : > { %954 = vmatmul.mubr.msk.f32.vlgmr.msra.gmra.mrb[0].mxu0 %vm252_vm1, %v202_v25  ;;  %978 = vmatmul.mubr.msk.f32.vlgmr.msra.gmra.mrb[0].mxu1 %vm252_vm1, %v226_v26 }
  0x42   : > { %471 = vmatprep.mubr.f32.mxu0 %v1152_v0  ;;  %615 = vmatprep.mubr.f32.mxu1 %v1152_v0 }
  0x45   : > { %955 = vmatmul.mubr.msk.f32.gmra.mrb[2].mxu0 %vm252_vm1, %v203_v27  ;;  %979 = vmatmul.mubr.msk.f32.gmra.mrb[2].mxu1 %vm252_vm1, %v227_v28 }
  0x46   : > { %477 = vmatprep.mubr.f32.mxu0 %v1152_v0  ;;  %621 = vmatprep.mubr.f32.mxu1 %v1152_v0 }
  0x49   : > { %956 = vmatmul.mubr.msk.f32.gmra.mrb[4].mxu0 %vm252_vm1, %v204_v29  ;;  %980 = vmatmul.mubr.msk.f32.gmra.mrb[4].mxu1 %vm252_vm1, %v228_v30 }
  0x4a   : > { %483 = vmatprep.mubr.f32.mxu0 %v1152_v0  ;;  %627 = vmatprep.mubr.f32.mxu1 %v1152_v0 }
  0x4d   : > { %957 = vmatmul.mubr.msk.f32.gmra.mrb[6].mxu0 %vm252_vm1, %v205_v31  ;;  %981 = vmatmul.mubr.msk.f32.gmra.mrb[6].mxu1 %vm252_vm1, %v229_v32 }
  0x4e   : > { %489 = vmatprep.mubr.f32.mxu0 %v1152_v0  ;;  %633 = vmatprep.mubr.f32.mxu1 %v1152_v0 }
  0x51   : > { %958 = vmatmul.mubr.msk.f32.gmra.mrb[8].mxu0 %vm252_vm1, %v206_v33  ;;  %982 = vmatmul.mubr.msk.f32.gmra.mrb[8].mxu1 %vm252_vm1, %v230_v34 }
  0x52   : > { %495 = vmatprep.mubr.f32.mxu0 %v1152_v0  ;;  %639 = vmatprep.mubr.f32.mxu1 %v1152_v0 }
  0x55   : > { %959 = vmatmul.mubr.msk.f32.gmra.mrb[10].mxu0 %vm252_vm1, %v207_v35  ;;  %983 = vmatmul.mubr.msk.f32.gmra.mrb[10].mxu1 %vm252_vm1, %v231_v36 }
  0x56   : > { %501 = vmatprep.mubr.f32.mxu0 %v1152_v0  ;;  %645 = vmatprep.mubr.f32.mxu1 %v1152_v0 }
  0x59   : > { %960 = vmatmul.mubr.msk.f32.gmra.mrb[12].mxu0 %vm252_vm1, %v208_v37  ;;  %984 = vmatmul.mubr.msk.f32.gmra.mrb[12].mxu1 %vm252_vm1, %v232_v38 }
  0x5a   : > { %507 = vmatprep.mubr.f32.mxu0 %v1152_v0  ;;  %651 = vmatprep.mubr.f32.mxu1 %v1152_v0 }
  0x5d   : > { %961 = vmatmul.mubr.msk.f32.gmra.mrb[14].mxu0 %vm252_vm1, %v209_v39  ;;  %985 = vmatmul.mubr.msk.f32.gmra.mrb[14].mxu1 %vm252_vm1, %v233_v40 }
  0x5e   : > { %513 = vmatprep.mubr.f32.mxu0 %v1152_v0  ;;  %657 = vmatprep.mubr.f32.mxu1 %v1152_v0 }
  0x61   : > { %962 = vmatmul.mubr.msk.f32.gmra.mrb[16].mxu0 %vm252_vm1, %v210_v41  ;;  %986 = vmatmul.mubr.msk.f32.gmra.mrb[16].mxu1 %vm252_vm1, %v234_v42 }
  0x62   : > { %519 = vmatprep.mubr.f32.mxu0 %v1152_v0  ;;  %663 = vmatprep.mubr.f32.mxu1 %v1152_v0 }
  0x65   : > { %963 = vmatmul.mubr.msk.f32.gmra.mrb[18].mxu0 %vm252_vm1, %v211_v43  ;;  %987 = vmatmul.mubr.msk.f32.gmra.mrb[18].mxu1 %vm252_vm1, %v235_v44 }
  0x66   : > { %525 = vmatprep.mubr.f32.mxu0 %v1152_v0  ;;  %669 = vmatprep.mubr.f32.mxu1 %v1152_v0 }
  0x69   : > { %964 = vmatmul.mubr.msk.f32.gmra.mrb[20].mxu0 %vm252_vm1, %v212_v45  ;;  %988 = vmatmul.mubr.msk.f32.gmra.mrb[20].mxu1 %vm252_vm1, %v236_v46 }
  0x6a   : > { %531 = vmatprep.mubr.f32.mxu0 %v1152_v0  ;;  %675 = vmatprep.mubr.f32.mxu1 %v1152_v0 }
  0x6d   : > { %965 = vmatmul.mubr.msk.f32.gmra.mrb[22].mxu0 %vm252_vm1, %v213_v47  ;;  %989 = vmatmul.mubr.msk.f32.gmra.mrb[22].mxu1 %vm252_vm1, %v237_v48 }
  0x6e   : > { %537 = vmatprep.mubr.f32.mxu0 %v1152_v0  ;;  %681 = vmatprep.mubr.f32.mxu1 %v1152_v0 }
  0x71   : > { %966 = vmatmul.mubr.msk.f32.gmra.mrb[24].mxu0 %vm252_vm1, %v214_v49  ;;  %990 = vmatmul.mubr.msk.f32.gmra.mrb[24].mxu1 %vm252_vm1, %v238_v50 }
  0x72   : > { %543 = vmatprep.mubr.f32.mxu0 %v1152_v0  ;;  %687 = vmatprep.mubr.f32.mxu1 %v1152_v0 }
  0x75   : > { %967 = vmatmul.mubr.msk.f32.gmra.mrb[26].mxu0 %vm252_vm1, %v215_v51  ;;  %991 = vmatmul.mubr.msk.f32.gmra.mrb[26].mxu1 %vm252_vm1, %v239_v52 }
  0x76   : > { %549 = vmatprep.mubr.f32.mxu0 %v1152_v0  ;;  %693 = vmatprep.mubr.f32.mxu1 %v1152_v0 }
  0x79   : > { %968 = vmatmul.mubr.msk.f32.gmra.mrb[28].mxu0 %vm252_vm1, %v216_v53  ;;  %992 = vmatmul.mubr.msk.f32.gmra.mrb[28].mxu1 %vm252_vm1, %v240_v54 }
  0x7a   : > { %555 = vmatprep.mubr.f32.mxu0 %v1152_v0  ;;  %699 = vmatprep.mubr.f32.mxu1 %v1152_v0 }
  0x7d   : > { %969 = vmatmul.mubr.msk.f32.gmra.mrb[30].mxu0 %vm252_vm1, %v217_v55  ;;  %993 = vmatmul.mubr.msk.f32.gmra.mrb[30].mxu1 %vm252_vm1, %v241_v56 }
  0x7e   : > { %561 = vmatprep.mubr.f32.mxu0 %v1152_v0  ;;  %705 = vmatprep.mubr.f32.mxu1 %v1152_v0 }
  0x81   : > { %970 = vmatmul.mubr.msk.f32.gmra.mrb[32].mxu0 %vm252_vm1, %v218_v57  ;;  %994 = vmatmul.mubr.msk.f32.gmra.mrb[32].mxu1 %vm252_vm1, %v242_v58 }
  0x82   : > { %567 = vmatprep.mubr.f32.mxu0 %v1152_v0  ;;  %711 = vmatprep.mubr.f32.mxu1 %v1152_v0 }
  0x85   : > { %971 = vmatmul.mubr.msk.f32.gmra.mrb[34].mxu0 %vm252_vm1, %v219_v59  ;;  %995 = vmatmul.mubr.msk.f32.gmra.mrb[34].mxu1 %vm252_vm1, %v243_v60 }
  0x86   : > { %573 = vmatprep.mubr.f32.mxu0 %v1152_v0  ;;  %717 = vmatprep.mubr.f32.mxu1 %v1152_v0 }
  0x89   : > { %972 = vmatmul.mubr.msk.f32.gmra.mrb[36].mxu0 %vm252_vm1, %v220_v61  ;;  %996 = vmatmul.mubr.msk.f32.gmra.mrb[36].mxu1 %vm252_vm1, %v244_v62 }
  0x8a   : > { %579 = vmatprep.mubr.f32.mxu0 %v1152_v0  ;;  %723 = vmatprep.mubr.f32.mxu1 %v1152_v0 }
  0x8d   : > { %973 = vmatmul.mubr.msk.f32.gmra.mrb[38].mxu0 %vm252_vm1, %v221_v63  ;;  %997 = vmatmul.mubr.msk.f32.gmra.mrb[38].mxu1 %vm252_vm1, %v245_v1 }
  0x8e   : > { %585 = vmatprep.mubr.f32.mxu0 %v1152_v0  ;;  %729 = vmatprep.mubr.f32.mxu1 %v1152_v0 }
  0x91   : > { %974 = vmatmul.mubr.msk.f32.gmra.mrb[40].mxu0 %vm252_vm1, %v222_v2  ;;  %998 = vmatmul.mubr.msk.f32.gmra.mrb[40].mxu1 %vm252_vm1, %v246_v3 }
  0x92   : > { %591 = vmatprep.mubr.f32.mxu0 %v1152_v0  ;;  %735 = vmatprep.mubr.f32.mxu1 %v1152_v0 }
  0x95   : > { %975 = vmatmul.mubr.msk.f32.gmra.mrb[42].mxu0 %vm252_vm1, %v223_v4  ;;  %999 = vmatmul.mubr.msk.f32.gmra.mrb[42].mxu1 %vm252_vm1, %v247_v5 }
  0x96   : > { %597 = vmatprep.mubr.f32.mxu0 %v1152_v0  ;;  %741 = vmatprep.mubr.f32.mxu1 %v1152_v0 }
  0x99   : > { %976 = vmatmul.mubr.msk.f32.gmra.mrb[44].mxu0 %vm252_vm1, %v224_v6  ;;  %1000 = vmatmul.mubr.msk.f32.gmra.mrb[44].mxu1 %vm252_vm1, %v248_v7 }
  0x9a   : > { %603 = vmatprep.mubr.f32.mxu0 %v1152_v0  ;;  %747 = vmatprep.mubr.f32.mxu1 %v1152_v0 }
  0x9d   : > { %977 = vmatmul.mubr.msk.f32.gmra.mrb[46].mxu0 %vm252_vm1, %v225_v8  ;;  %1001 = vmatmul.mubr.msk.f32.gmra.mrb[46].mxu1 %vm252_vm1, %v249_v9 }
 0x114   : > { %v467_v10 = vpop.f32.mrb[0].mxu0  ;;  %v611_v11 = vpop.f32.mrb[0].mxu1 }
 0x115   : > { %754 = vst [vmem:[%s1480_s8] sm:$0xff] %v467_v10  ;;  %802 = vst [vmem:[%s1480_s8 + $0x180] sm:$0xff] %v611_v11  ;;  %v469_v0 = vpop.f32.mrb[1].mxu0  ;;  %v613_v12 = vpop.f32.mrb[1].mxu1 }
 0x116   : > { %755 = vst [vmem:[%s1480_s8 + $0x8] sm:$0xff] %v469_v0  ;;  %803 = vst [vmem:[%s1480_s8 + $0x188] sm:$0xff] %v613_v12 }
 0x118   : > { %v473_v13 = vpop.f32.mrb[2].mxu0  ;;  %v617_v14 = vpop.f32.mrb[2].mxu1 }
 0x119   : > { %756 = vst [vmem:[%s1480_s8 + $0x10] sm:$0xff] %v473_v13  ;;  %804 = vst [vmem:[%s1480_s8 + $0x190] sm:$0xff] %v617_v14  ;;  %v475_v15 = vpop.f32.mrb[3].mxu0  ;;  %v619_v16 = vpop.f32.mrb[3].mxu1 }
 0x11a   : > { %757 = vst [vmem:[%s1480_s8 + $0x18] sm:$0xff] %v475_v15  ;;  %805 = vst [vmem:[%s1480_s8 + $0x198] sm:$0xff] %v619_v16 }
 0x11c   : > { %v479_v17 = vpop.f32.mrb[4].mxu0  ;;  %v623_v18 = vpop.f32.mrb[4].mxu1 }
 0x11d   : > { %758 = vst [vmem:[%s1480_s8 + $0x20] sm:$0xff] %v479_v17  ;;  %806 = vst [vmem:[%s1480_s8 + $0x1a0] sm:$0xff] %v623_v18  ;;  %v481_v19 = vpop.f32.mrb[5].mxu0  ;;  %v625_v20 = vpop.f32.mrb[5].mxu1 }
 0x11e   : > { %759 = vst [vmem:[%s1480_s8 + $0x28] sm:$0xff] %v481_v19  ;;  %807 = vst [vmem:[%s1480_s8 + $0x1a8] sm:$0xff] %v625_v20 }
 0x120   : > { %v485_v21 = vpop.f32.mrb[6].mxu0  ;;  %v629_v22 = vpop.f32.mrb[6].mxu1 }
 0x121   : > { %760 = vst [vmem:[%s1480_s8 + $0x30] sm:$0xff] %v485_v21  ;;  %808 = vst [vmem:[%s1480_s8 + $0x1b0] sm:$0xff] %v629_v22  ;;  %v487_v23 = vpop.f32.mrb[7].mxu0  ;;  %v631_v24 = vpop.f32.mrb[7].mxu1 }
 0x122   : > { %761 = vst [vmem:[%s1480_s8 + $0x38] sm:$0xff] %v487_v23  ;;  %809 = vst [vmem:[%s1480_s8 + $0x1b8] sm:$0xff] %v631_v24 }
 0x124   : > { %v491_v25 = vpop.f32.mrb[8].mxu0  ;;  %v635_v26 = vpop.f32.mrb[8].mxu1 }
 0x125   : > { %762 = vst [vmem:[%s1480_s8 + $0x40] sm:$0xff] %v491_v25  ;;  %810 = vst [vmem:[%s1480_s8 + $0x1c0] sm:$0xff] %v635_v26  ;;  %v493_v27 = vpop.f32.mrb[9].mxu0  ;;  %v637_v28 = vpop.f32.mrb[9].mxu1 }
 0x126   : > { %763 = vst [vmem:[%s1480_s8 + $0x48] sm:$0xff] %v493_v27  ;;  %811 = vst [vmem:[%s1480_s8 + $0x1c8] sm:$0xff] %v637_v28 }
 0x128   : > { %v497_v29 = vpop.f32.mrb[10].mxu0  ;;  %v641_v30 = vpop.f32.mrb[10].mxu1 }
 0x129   : > { %764 = vst [vmem:[%s1480_s8 + $0x50] sm:$0xff] %v497_v29  ;;  %812 = vst [vmem:[%s1480_s8 + $0x1d0] sm:$0xff] %v641_v30  ;;  %v499_v31 = vpop.f32.mrb[11].mxu0  ;;  %v643_v32 = vpop.f32.mrb[11].mxu1 }
 0x12a   : > { %765 = vst [vmem:[%s1480_s8 + $0x58] sm:$0xff] %v499_v31  ;;  %813 = vst [vmem:[%s1480_s8 + $0x1d8] sm:$0xff] %v643_v32 }
 0x12c   : > { %v503_v33 = vpop.f32.mrb[12].mxu0  ;;  %v647_v34 = vpop.f32.mrb[12].mxu1 }
 0x12d   : > { %766 = vst [vmem:[%s1480_s8 + $0x60] sm:$0xff] %v503_v33  ;;  %814 = vst [vmem:[%s1480_s8 + $0x1e0] sm:$0xff] %v647_v34  ;;  %v505_v35 = vpop.f32.mrb[13].mxu0  ;;  %v649_v36 = vpop.f32.mrb[13].mxu1 }
 0x12e   : > { %767 = vst [vmem:[%s1480_s8 + $0x68] sm:$0xff] %v505_v35  ;;  %815 = vst [vmem:[%s1480_s8 + $0x1e8] sm:$0xff] %v649_v36 }
 0x130   : > { %v509_v37 = vpop.f32.mrb[14].mxu0  ;;  %v653_v38 = vpop.f32.mrb[14].mxu1 }
 0x131   : > { %768 = vst [vmem:[%s1480_s8 + $0x70] sm:$0xff] %v509_v37  ;;  %816 = vst [vmem:[%s1480_s8 + $0x1f0] sm:$0xff] %v653_v38  ;;  %v511_v39 = vpop.f32.mrb[15].mxu0  ;;  %v655_v40 = vpop.f32.mrb[15].mxu1 }
 0x132   : > { %769 = vst [vmem:[%s1480_s8 + $0x78] sm:$0xff] %v511_v39  ;;  %817 = vst [vmem:[%s1480_s8 + $0x1f8] sm:$0xff] %v655_v40 }
 0x134   : > { %v515_v41 = vpop.f32.mrb[16].mxu0  ;;  %v659_v42 = vpop.f32.mrb[16].mxu1 }
 0x135   : > { %770 = vst [vmem:[%s1480_s8 + $0x80] sm:$0xff] %v515_v41  ;;  %818 = vst [vmem:[%s1480_s8 + $0x200] sm:$0xff] %v659_v42  ;;  %v517_v43 = vpop.f32.mrb[17].mxu0  ;;  %v661_v44 = vpop.f32.mrb[17].mxu1 }
 0x136   : > { %771 = vst [vmem:[%s1480_s8 + $0x88] sm:$0xff] %v517_v43  ;;  %819 = vst [vmem:[%s1480_s8 + $0x208] sm:$0xff] %v661_v44 }
 0x138   : > { %v521_v45 = vpop.f32.mrb[18].mxu0  ;;  %v665_v46 = vpop.f32.mrb[18].mxu1 }
 0x139   : > { %772 = vst [vmem:[%s1480_s8 + $0x90] sm:$0xff] %v521_v45  ;;  %820 = vst [vmem:[%s1480_s8 + $0x210] sm:$0xff] %v665_v46  ;;  %v523_v47 = vpop.f32.mrb[19].mxu0  ;;  %v667_v48 = vpop.f32.mrb[19].mxu1 }
 0x13a   : > { %773 = vst [vmem:[%s1480_s8 + $0x98] sm:$0xff] %v523_v47  ;;  %821 = vst [vmem:[%s1480_s8 + $0x218] sm:$0xff] %v667_v48 }
 0x13c   : > { %v527_v49 = vpop.f32.mrb[20].mxu0  ;;  %v671_v50 = vpop.f32.mrb[20].mxu1 }
 0x13d   : > { %774 = vst [vmem:[%s1480_s8 + $0xa0] sm:$0xff] %v527_v49  ;;  %822 = vst [vmem:[%s1480_s8 + $0x220] sm:$0xff] %v671_v50  ;;  %v529_v51 = vpop.f32.mrb[21].mxu0  ;;  %v673_v52 = vpop.f32.mrb[21].mxu1 }
 0x13e   : > { %775 = vst [vmem:[%s1480_s8 + $0xa8] sm:$0xff] %v529_v51  ;;  %823 = vst [vmem:[%s1480_s8 + $0x228] sm:$0xff] %v673_v52 }
 0x140   : > { %v533_v53 = vpop.f32.mrb[22].mxu0  ;;  %v677_v54 = vpop.f32.mrb[22].mxu1 }
 0x141   : > { %776 = vst [vmem:[%s1480_s8 + $0xb0] sm:$0xff] %v533_v53  ;;  %824 = vst [vmem:[%s1480_s8 + $0x230] sm:$0xff] %v677_v54  ;;  %v535_v55 = vpop.f32.mrb[23].mxu0  ;;  %v679_v56 = vpop.f32.mrb[23].mxu1 }
 0x142   : > { %777 = vst [vmem:[%s1480_s8 + $0xb8] sm:$0xff] %v535_v55  ;;  %825 = vst [vmem:[%s1480_s8 + $0x238] sm:$0xff] %v679_v56 }
 0x144   : > { %v539_v57 = vpop.f32.mrb[24].mxu0  ;;  %v683_v58 = vpop.f32.mrb[24].mxu1 }
 0x145   : > { %778 = vst [vmem:[%s1480_s8 + $0xc0] sm:$0xff] %v539_v57  ;;  %826 = vst [vmem:[%s1480_s8 + $0x240] sm:$0xff] %v683_v58  ;;  %v541_v59 = vpop.f32.mrb[25].mxu0  ;;  %v685_v60 = vpop.f32.mrb[25].mxu1 }
 0x146   : > { %779 = vst [vmem:[%s1480_s8 + $0xc8] sm:$0xff] %v541_v59  ;;  %827 = vst [vmem:[%s1480_s8 + $0x248] sm:$0xff] %v685_v60 }
 0x148   : > { %v545_v61 = vpop.f32.mrb[26].mxu0  ;;  %v689_v62 = vpop.f32.mrb[26].mxu1 }
 0x149   : > { %780 = vst [vmem:[%s1480_s8 + $0xd0] sm:$0xff] %v545_v61  ;;  %828 = vst [vmem:[%s1480_s8 + $0x250] sm:$0xff] %v689_v62  ;;  %v547_v63 = vpop.f32.mrb[27].mxu0  ;;  %v691_v1 = vpop.f32.mrb[27].mxu1 }
 0x14a   : > { %781 = vst [vmem:[%s1480_s8 + $0xd8] sm:$0xff] %v547_v63  ;;  %829 = vst [vmem:[%s1480_s8 + $0x258] sm:$0xff] %v691_v1 }
 0x14c   : > { %v551_v2 = vpop.f32.mrb[28].mxu0  ;;  %v695_v3 = vpop.f32.mrb[28].mxu1 }
 0x14d   : > { %782 = vst [vmem:[%s1480_s8 + $0xe0] sm:$0xff] %v551_v2  ;;  %830 = vst [vmem:[%s1480_s8 + $0x260] sm:$0xff] %v695_v3  ;;  %v553_v4 = vpop.f32.mrb[29].mxu0  ;;  %v697_v5 = vpop.f32.mrb[29].mxu1 }
 0x14e   : > { %783 = vst [vmem:[%s1480_s8 + $0xe8] sm:$0xff] %v553_v4  ;;  %831 = vst [vmem:[%s1480_s8 + $0x268] sm:$0xff] %v697_v5 }
 0x150   : > { %v557_v6 = vpop.f32.mrb[30].mxu0  ;;  %v701_v7 = vpop.f32.mrb[30].mxu1 }
 0x151   : > { %784 = vst [vmem:[%s1480_s8 + $0xf0] sm:$0xff] %v557_v6  ;;  %832 = vst [vmem:[%s1480_s8 + $0x270] sm:$0xff] %v701_v7  ;;  %v559_v8 = vpop.f32.mrb[31].mxu0  ;;  %v703_v9 = vpop.f32.mrb[31].mxu1 }
 0x152   : > { %785 = vst [vmem:[%s1480_s8 + $0xf8] sm:$0xff] %v559_v8  ;;  %833 = vst [vmem:[%s1480_s8 + $0x278] sm:$0xff] %v703_v9 }
 0x154   : > { %v563_v10 = vpop.f32.mrb[32].mxu0  ;;  %v707_v11 = vpop.f32.mrb[32].mxu1 }
 0x155   : > { %786 = vst [vmem:[%s1480_s8 + $0x100] sm:$0xff] %v563_v10  ;;  %834 = vst [vmem:[%s1480_s8 + $0x280] sm:$0xff] %v707_v11  ;;  %v565_v0 = vpop.f32.mrb[33].mxu0  ;;  %v709_v12 = vpop.f32.mrb[33].mxu1 }
 0x156   : > { %787 = vst [vmem:[%s1480_s8 + $0x108] sm:$0xff] %v565_v0  ;;  %835 = vst [vmem:[%s1480_s8 + $0x288] sm:$0xff] %v709_v12 }
 0x158   : > { %v569_v13 = vpop.f32.mrb[34].mxu0  ;;  %v713_v14 = vpop.f32.mrb[34].mxu1 }
 0x159   : > { %788 = vst [vmem:[%s1480_s8 + $0x110] sm:$0xff] %v569_v13  ;;  %836 = vst [vmem:[%s1480_s8 + $0x290] sm:$0xff] %v713_v14  ;;  %v571_v15 = vpop.f32.mrb[35].mxu0  ;;  %v715_v16 = vpop.f32.mrb[35].mxu1 }
 0x15a   : > { %789 = vst [vmem:[%s1480_s8 + $0x118] sm:$0xff] %v571_v15  ;;  %837 = vst [vmem:[%s1480_s8 + $0x298] sm:$0xff] %v715_v16 }
 0x15c   : > { %v575_v17 = vpop.f32.mrb[36].mxu0  ;;  %v719_v18 = vpop.f32.mrb[36].mxu1 }
 0x15d   : > { %790 = vst [vmem:[%s1480_s8 + $0x120] sm:$0xff] %v575_v17  ;;  %838 = vst [vmem:[%s1480_s8 + $0x2a0] sm:$0xff] %v719_v18  ;;  %v577_v19 = vpop.f32.mrb[37].mxu0  ;;  %v721_v20 = vpop.f32.mrb[37].mxu1 }
 0x15e   : > { %791 = vst [vmem:[%s1480_s8 + $0x128] sm:$0xff] %v577_v19  ;;  %839 = vst [vmem:[%s1480_s8 + $0x2a8] sm:$0xff] %v721_v20 }
 0x160   : > { %v581_v21 = vpop.f32.mrb[38].mxu0  ;;  %v725_v22 = vpop.f32.mrb[38].mxu1 }
 0x161   : > { %792 = vst [vmem:[%s1480_s8 + $0x130] sm:$0xff] %v581_v21  ;;  %840 = vst [vmem:[%s1480_s8 + $0x2b0] sm:$0xff] %v725_v22  ;;  %v583_v23 = vpop.f32.mrb[39].mxu0  ;;  %v727_v24 = vpop.f32.mrb[39].mxu1 }
 0x162   : > { %793 = vst [vmem:[%s1480_s8 + $0x138] sm:$0xff] %v583_v23  ;;  %841 = vst [vmem:[%s1480_s8 + $0x2b8] sm:$0xff] %v727_v24 }
 0x164   : > { %v587_v25 = vpop.f32.mrb[40].mxu0  ;;  %v731_v26 = vpop.f32.mrb[40].mxu1 }
 0x165   : > { %794 = vst [vmem:[%s1480_s8 + $0x140] sm:$0xff] %v587_v25  ;;  %842 = vst [vmem:[%s1480_s8 + $0x2c0] sm:$0xff] %v731_v26  ;;  %v589_v27 = vpop.f32.mrb[41].mxu0  ;;  %v733_v28 = vpop.f32.mrb[41].mxu1 }
 0x166   : > { %795 = vst [vmem:[%s1480_s8 + $0x148] sm:$0xff] %v589_v27  ;;  %843 = vst [vmem:[%s1480_s8 + $0x2c8] sm:$0xff] %v733_v28 }
 0x168   : > { %v593_v29 = vpop.f32.mrb[42].mxu0  ;;  %v737_v30 = vpop.f32.mrb[42].mxu1 }
 0x169   : > { %796 = vst [vmem:[%s1480_s8 + $0x150] sm:$0xff] %v593_v29  ;;  %844 = vst [vmem:[%s1480_s8 + $0x2d0] sm:$0xff] %v737_v30  ;;  %v595_v31 = vpop.f32.mrb[43].mxu0  ;;  %v739_v32 = vpop.f32.mrb[43].mxu1 }
 0x16a   : > { %797 = vst [vmem:[%s1480_s8 + $0x158] sm:$0xff] %v595_v31  ;;  %845 = vst [vmem:[%s1480_s8 + $0x2d8] sm:$0xff] %v739_v32 }
 0x16c   : > { %v599_v33 = vpop.f32.mrb[44].mxu0  ;;  %v743_v34 = vpop.f32.mrb[44].mxu1 }
 0x16d   : > { %798 = vst [vmem:[%s1480_s8 + $0x160] sm:$0xff] %v599_v33  ;;  %846 = vst [vmem:[%s1480_s8 + $0x2e0] sm:$0xff] %v743_v34  ;;  %v601_v35 = vpop.f32.mrb[45].mxu0  ;;  %v745_v36 = vpop.f32.mrb[45].mxu1 }
 0x16e   : > { %799 = vst [vmem:[%s1480_s8 + $0x168] sm:$0xff] %v601_v35  ;;  %847 = vst [vmem:[%s1480_s8 + $0x2e8] sm:$0xff] %v745_v36 }
 0x170   : > { %v605_v37 = vpop.f32.mrb[46].mxu0  ;;  %v749_v38 = vpop.f32.mrb[46].mxu1 }
 0x171   : > { %800 = vst [vmem:[%s1480_s8 + $0x170] sm:$0xff] %v605_v37  ;;  %848 = vst [vmem:[%s1480_s8 + $0x2f0] sm:$0xff] %v749_v38  ;;  %v607_v39 = vpop.f32.mrb[47].mxu0  ;;  %v751_v40 = vpop.f32.mrb[47].mxu1 }
 0x172   : > { %801 = vst [vmem:[%s1480_s8 + $0x178] sm:$0xff] %v607_v39  ;;  %849 = vst [vmem:[%s1480_s8 + $0x2f8] sm:$0xff] %v751_v40 }
 0x173   : > { %1085 = shalt.err (!%p1082_p5)
}
 0x174   : > { %s1086_s28 = scalar_lea.hbm %s1579_s23, 12288  ;;  %s1090_s3 = scalar_lea.hbm %s1637_s2, 24576 }
 0x175   : > { %p1087_p6 = scmp.ne.s32.totalorder %s1579_s23, %s1086_s28  ;;  %p1091_p10 = scmp.lt.u32.totalorder %s1579_s23, %s1637_s2 }
 0x176   : > { %p1092_p11 = scmp.lt.u32.totalorder %s1090_s3, %s1086_s28  ;;  %p1094_p13 = scmp.lt.u32.totalorder %s1086_s28, %s1579_s23 }
 0x177   : > { %p1088_p7 = pnand %p1087_p6, %p1211_p4 }
 0x178   : > { %p1093_p12 = por %p1092_p11, %p1091_p10 }
 0x179   : > { %p1089_p9 = pneg %p1088_p7 }
 0x17a   : > { %p1095_p0 = por %p1094_p13, %p1093_p12 }
 0x17c   : > { %p1096_p1 = pnand %p1095_p0, %p1089_p9 }
 0x17e   : > { %1099 = shalt.err (!%p1096_p1)
}
 0x17f   : > { %s1154_s6 = smov 256   ;;  %s1155_s7 = smov 16  }
 0x180   : > { %1010 = dma.vmem_to_hbm [thread:$0]  (%p1211_p4), %s1581_s16, 12288, %s1579_s23, %s1589_s12, %s1154_s6, %s1154_s6, %s1155_s7  }
 0x181 PF: > { %p1016_p2 = scmp.ge.s32.totalorder %s1150_s14, 2  ;;  %s881_s8 = sand.u32 1, %s1130_s9  }
 0x182   : > { %s882_s15 = scalar_lea.sflag [#allocation3], %s881_s8 }
 0x183   : > { %p1013_p3 = pnand %p1016_p2, %p1218_p8 }
 0x185   : > { %1125 = dma.done.wait (!%p1013_p3), %s882_s15, 12288  }
 0x186   : > { %1127 = vsyncadd (!%p1013_p3), %s882_s15, 4294955008  ;;  %s15_s14 = sadd.s32 1, %s1150_s14   ;;  %s1640_s9 = smov %s1134_s10 }
 0x187   : > { %p12_p5 = scmp.ge.s32.totalorder %s15_s14, 4   ;;  %s1641_s10 = smov %s1138_s11 }
 0x188   : > { %s1642_s11 = smov %s1224_s22  ;;  %s1643_s12 = smov %s1146_s13 }
 0x189   : > { %s1644_s13 = smov %s1646_s17  ;;  %14 = sbr.rel (!%p12_p5) target bundleno = 4 (0x4), region = 63 }
 0x190   :  { %887 = vsyncpa [#allocation3], 1 }
 0x191   :  { %889 = vsyncpa [#allocation3 + $0x1], 1 }

</bundles_post_ra>
